<compile_context>
chip_gen: v5e
topology: v5e:2x2
jax: 0.10.0
libtpu: 0.0.40
codegen_flags: <defaults>
</compile_context>

<pallas_src>
import functools
import math

import jax
import jax.numpy as jnp
import numpy as np
from jax.experimental import pallas as pl
from jax.experimental.pallas import tpu as pltpu


def _sde_euler_chunk_kernel(dt, hidden, t_chunk,
                            y0_ref, wcat_ref, bcat_ref, wf2_ref, bf2_ref,
                            noise_ref, out_ref, y_carry):
    """One (s_block, t_chunk) tile of Euler–Maruyama for dy = f(y)dt + g(y)dW.

    y0_ref    : (SB, D)          initial state block (first_point)
    wcat_ref  : (D, H+D)         fused [drift layer-1 | diffusion] weights
    bcat_ref  : (1, H+D)         fused biases
    wf2_ref   : (H, D), bf2_ref : (1, D)   drift MLP layer 2
    noise_ref : (TC, SB, D)      standard-normal draws for this chunk
    out_ref   : (TC, SB, D)      trajectory chunk, out[global 0] == y0
    y_carry   : (SB, D) f32      state carried across time chunks
    """
    sqrt_dt = dt ** 0.5
    sb, d = y_carry.shape

    # ---- hoisted per-chunk loads / broadcasts (not re-emitted per step) ----
    wcat = wcat_ref[...]                                   # (D, H+D)
    wf2 = wf2_ref[...]                                     # (H, D)
    bcat = jnp.broadcast_to(bcat_ref[...], (sb, hidden + d))
    bf2 = jnp.broadcast_to(bf2_ref[...], (sb, d))

    # ---- initialize the state carry on the first time-chunk ----------------
    @pl.when(pl.program_id(1) == 0)
    def _():
        y_carry[...] = y0_ref[...].astype(jnp.float32)

    y = y_carry[...]

    # ---- fully unrolled time loop (t_chunk is small & static) --------------
    for t in range(t_chunk):
        # trajectory stores the state BEFORE the step => out[0] == y0,
        # matching sdeint's contract for uniformly spaced ts.
        out_ref[t] = y.astype(out_ref.dtype)
        dw = noise_ref[t] * sqrt_dt                        # Brownian increment
        # single fused MXU push: [drift-hidden | diffusion] = y @ [wf1 | wg]
        pre = jnp.dot(y, wcat, preferred_element_type=jnp.float32) + bcat
        h = jnp.tanh(pre[:, :hidden])                      # drift hidden
        g = jax.nn.sigmoid(pre[:, hidden:])                # diagonal diffusion
        f = jnp.dot(h, wf2, preferred_element_type=jnp.float32) + bf2
        y = y + f * dt + g * dw

    y_carry[...] = y                                       # carry to next chunk


def sdiffeq_solver_forward(first_point, time_steps_to_predict, params, noise,
                           dt=0.05, t_chunk=8):
    """JAX/Pallas equivalent of SDiffeqSolver.forward.

    first_point            : (n_traj_samples, n_traj) float32
    time_steps_to_predict  : (T,) float32 (uniformly spaced by dt)
    noise                  : (T, n_traj_samples, n_traj) standard normals
    returns pred_y         : (n_traj_samples, n_traj, T)
    """
    S, D = first_point.shape
    T = time_steps_to_predict.shape[0]
    wf1, bf1, wf2, bf2, wg, bg = params
    H = wf1.shape[1]
    assert noise.shape == (T, S, D)

    # ts must be uniformly spaced by dt (Euler with fixed dt, no adaptivity).
    try:
        ts_np = np.asarray(time_steps_to_predict)
    except Exception:  # traced: skip the concrete check
        ts_np = None
    if ts_np is not None and ts_np.shape[0] > 1:
        assert np.allclose(np.diff(ts_np), float(dt), atol=1e-5), \
            "time_steps_to_predict must be uniformly spaced by dt"

    # Fuse drift-layer-1 and diffusion weights -> one MXU push per step.
    w_cat = jnp.concatenate([wf1, wg], axis=1)             # (D, H+D)
    b_cat = jnp.concatenate([bf1, bg], axis=1)             # (1, H+D)

    # ---- tiling -------------------------------------------------------------
    t_chunk = max(1, min(int(t_chunk), T))
    n_t = -(-T // t_chunk)
    T_pad = n_t * t_chunk
    if T_pad != T:
        noise = jnp.pad(noise, ((0, T_pad - T), (0, 0), (0, 0)))
    # sublane-aligned S blocks so the "parallel" axis can shard across cores.
    s_block = 8 if (S >= 8 and S % 8 == 0) else S
    n_s = S // s_block

    kernel = functools.partial(_sde_euler_chunk_kernel, float(dt), H, t_chunk)
    traj = pl.pallas_call(
        kernel,
        out_shape=jax.ShapeDtypeStruct((T_pad, S, D), jnp.float32),
        grid_spec=pltpu.PrefetchScalarGridSpec(
            num_scalar_prefetch=0,
            grid=(n_s, n_t),
            in_specs=[
                pl.BlockSpec((s_block, D), lambda s, t: (s, 0)),        # y0
                pl.BlockSpec((D, H + D), lambda s, t: (0, 0)),          # w_cat
                pl.BlockSpec((1, H + D), lambda s, t: (0, 0)),          # b_cat
                pl.BlockSpec((H, D), lambda s, t: (0, 0)),              # wf2
                pl.BlockSpec((1, D), lambda s, t: (0, 0)),              # bf2
                pl.BlockSpec((t_chunk, s_block, D),
                             lambda s, t: (t, s, 0)),                   # noise
            ],
            out_specs=pl.BlockSpec((t_chunk, s_block, D),
                                   lambda s, t: (t, s, 0)),
            scratch_shapes=[pltpu.VMEM((s_block, D), jnp.float32)],     # y carry
        ),
        compiler_params=pltpu.CompilerParams(
            dimension_semantics=("parallel", "arbitrary")),
    )(first_point, w_cat, b_cat, wf2, bf2, noise)

    if T_pad != T:
        traj = traj[:T]

    # pred_y = pred_y.permute(1, 2, 0)  -> (n_traj_samples, n_traj, T)
    pred_y = jnp.transpose(traj, (1, 2, 0))
    assert pred_y.shape[0] == S and pred_y.shape[1] == D
    return pred_y


def make_params(key, D, H):
    """Deterministic synthetic ode_func parameters (drift MLP + diffusion net)."""
    k1, k2, k3, k4, k5, k6 = jax.random.split(key, 6)
    wf1 = jax.random.normal(k1, (D, H), jnp.float32) * (1.0 / math.sqrt(D))
    bf1 = jax.random.normal(k2, (1, H), jnp.float32) * 0.01
    wf2 = jax.random.normal(k3, (H, D), jnp.float32) * (1.0 / math.sqrt(H))
    bf2 = jax.random.normal(k4, (1, D), jnp.float32) * 0.01
    wg = jax.random.normal(k5, (D, D), jnp.float32) * (1.0 / math.sqrt(D))
    bg = jax.random.normal(k6, (1, D), jnp.float32) * 0.01
    return wf1, bf1, wf2, bf2, wg, bg


def _reference_forward(first_point, T, params, noise, dt):
    """Pure-JAX Euler–Maruyama reference (same semantics as the kernel)."""
    wf1, bf1, wf2, bf2, wg, bg = params
    sqrt_dt = dt ** 0.5
    y = first_point.astype(jnp.float32)
    outs = []
    for t in range(T):
        outs.append(y)
        h = jnp.tanh(y @ wf1 + bf1)
        f = h @ wf2 + bf2
        g = jax.nn.sigmoid(y @ wg + bg)
        y = y + f * dt + g * (noise[t] * sqrt_dt)
    traj = jnp.stack(outs, axis=0)
    return jnp.transpose(traj, (1, 2, 0))


if __name__ == "__main__":
    key = jax.random.PRNGKey(0)
    k_y0, k_par, k_noise = jax.random.split(key, 3)

    # small shapes consistent with the module's forward:
    #   first_point: (n_traj_samples=8, n_traj=32), T=16 time points, dt=0.05
    S, D, H, T = 8, 32, 64, 16
    dt = 0.05

    first_point = jax.random.normal(k_y0, (S, D), jnp.float32)
    time_steps_to_predict = jnp.arange(T, dtype=jnp.float32) * dt
    params = make_params(k_par, D, H)
    # Brownian increments dW = sqrt(dt) * z,  z ~ N(0, 1)  (sampled as glue).
    noise = jax.random.normal(k_noise, (T, S, D), jnp.float32)

    pred_y = sdiffeq_solver_forward(first_point, time_steps_to_predict, params,
                                    noise, dt=dt, t_chunk=8)
    pred_y = jax.block_until_ready(pred_y)

    assert pred_y.shape == (S, D, T)
    assert pred_y.dtype == jnp.float32
    # sdeint returns the initial value at ts[0]
    assert jnp.allclose(pred_y[:, :, 0], first_point, atol=1e-6)
    assert bool(jnp.all(jnp.isfinite(pred_y)))

    # pure-JAX reference check (same Euler–Maruyama update).
    ref = jax.block_until_ready(
        _reference_forward(first_point, T, params, noise, dt))
    assert jnp.allclose(pred_y, ref, rtol=1e-4, atol=1e-4)

    print("KERNEL_OK")
</pallas_src>

<mosaic_0001>
module attributes {stable_mosaic.version = 11 : i64} {
  func.func @_sde_euler_chunk_kernel(%arg0: i32, %arg1: i32, %arg2: memref<8x32xf32, #tpu.memory_space<vmem>>, %arg3: memref<32x96xf32, #tpu.memory_space<vmem>>, %arg4: memref<1x96xf32, #tpu.memory_space<vmem>>, %arg5: memref<64x32xf32, #tpu.memory_space<vmem>>, %arg6: memref<1x32xf32, #tpu.memory_space<vmem>>, %arg7: memref<8x8x32xf32, #tpu.memory_space<vmem>>, %arg8: memref<8x8x32xf32, #tpu.memory_space<vmem>>, %arg9: memref<8x32xf32, #tpu.memory_space<vmem>>) attributes {dimension_semantics = [#tpu.dimension_semantics<parallel>, #tpu.dimension_semantics<arbitrary>], iteration_bounds = array<i64: 1, 2>, scalar_prefetch = 0 : i64, scratch_operands = 1 : i64, tpu.core_type = #tpu.core_type<tc>, window_params = [{transform_indices = @transform_0, window_bounds = array<i64: 8, 32>}, {pipeline_mode = #tpu.pipeline_mode<synchronous>, transform_indices = @transform_1, window_bounds = array<i64: 32, 96>}, {pipeline_mode = #tpu.pipeline_mode<synchronous>, transform_indices = @transform_2, window_bounds = array<i64: 1, 96>}, {pipeline_mode = #tpu.pipeline_mode<synchronous>, transform_indices = @transform_3, window_bounds = array<i64: 64, 32>}, {pipeline_mode = #tpu.pipeline_mode<synchronous>, transform_indices = @transform_4, window_bounds = array<i64: 1, 32>}, {transform_indices = @transform_5, window_bounds = array<i64: 8, 8, 32>}, {transform_indices = @transform_6, window_bounds = array<i64: 8, 8, 32>}]} {
    %c0 = arith.constant 0 : index
    %c0_0 = arith.constant 0 : index
    %0 = vector.load %arg3[%c0, %c0_0] : memref<32x96xf32, #tpu.memory_space<vmem>>, vector<32x96xf32>
    %c0_1 = arith.constant 0 : index
    %c0_2 = arith.constant 0 : index
    %1 = vector.load %arg5[%c0_1, %c0_2] : memref<64x32xf32, #tpu.memory_space<vmem>>, vector<64x32xf32>
    %c0_3 = arith.constant 0 : index
    %c0_4 = arith.constant 0 : index
    %2 = vector.load %arg4[%c0_3, %c0_4] : memref<1x96xf32, #tpu.memory_space<vmem>>, vector<1x96xf32>
    %3 = vector.shape_cast %2 : vector<1x96xf32> to vector<1x96xf32>
    %4 = vector.broadcast %3 : vector<1x96xf32> to vector<8x96xf32>
    %c0_5 = arith.constant 0 : index
    %c0_6 = arith.constant 0 : index
    %5 = vector.load %arg6[%c0_5, %c0_6] : memref<1x32xf32, #tpu.memory_space<vmem>>, vector<1x32xf32>
    %6 = vector.shape_cast %5 : vector<1x32xf32> to vector<1x32xf32>
    %7 = vector.broadcast %6 : vector<1x32xf32> to vector<8x32xf32>
    %c0_i32 = arith.constant 0 : i32
    %8 = arith.cmpi eq, %arg1, %c0_i32 : i32
    %9 = arith.extui %8 : i1 to i32
    %c0_i32_7 = arith.constant 0 : i32
    %10 = arith.cmpi ne, %9, %c0_i32_7 : i32
    scf.if %10 {
      %c0_92 = arith.constant 0 : index
      %c0_93 = arith.constant 0 : index
      %205 = vector.load %arg2[%c0_92, %c0_93] : memref<8x32xf32, #tpu.memory_space<vmem>>, vector<8x32xf32>
      %c0_94 = arith.constant 0 : index
      %c0_95 = arith.constant 0 : index
      %206 = vector.load %arg9[%c0_94, %c0_95] : memref<8x32xf32, #tpu.memory_space<vmem>>, vector<8x32xf32>
      tpu.vector_store %arg9[%c0_94, %c0_95], %205 {strides = array<i32>} : memref<8x32xf32, #tpu.memory_space<vmem>>, vector<8x32xf32>,
    } else {
    }
    %c0_8 = arith.constant 0 : index
    %c0_9 = arith.constant 0 : index
    %11 = vector.load %arg9[%c0_8, %c0_9] : memref<8x32xf32, #tpu.memory_space<vmem>>, vector<8x32xf32>
    %c0_10 = arith.constant 0 : index
    %c0_11 = arith.constant 0 : index
    %c0_12 = arith.constant 0 : index
    %12 = vector.load %arg8[%c0_10, %c0_11, %c0_12] : memref<8x8x32xf32, #tpu.memory_space<vmem>>, vector<1x8x32xf32>
    %13 = vector.shape_cast %12 : vector<1x8x32xf32> to vector<8x32xf32>
    %14 = vector.shape_cast %11 : vector<8x32xf32> to vector<1x8x32xf32>
    tpu.vector_store %arg8[%c0_10, %c0_11, %c0_12], %14 {strides = array<i32>} : memref<8x8x32xf32, #tpu.memory_space<vmem>>, vector<1x8x32xf32>,
    %c0_13 = arith.constant 0 : index
    %c0_14 = arith.constant 0 : index
    %c0_15 = arith.constant 0 : index
    %15 = vector.load %arg7[%c0_13, %c0_14, %c0_15] : memref<8x8x32xf32, #tpu.memory_space<vmem>>, vector<1x8x32xf32>
    %16 = vector.shape_cast %15 : vector<1x8x32xf32> to vector<8x32xf32>
    %cst = arith.constant 0.223606795 : f32
    %17 = vector.broadcast %cst : f32 to vector<8x32xf32>
    %18 = arith.mulf %16, %17 : vector<8x32xf32>
    %cst_16 = arith.constant dense<0.000000e+00> : vector<8x96xf32>
    %19 = tpu.matmul %11, %0, %cst_16 {dimension_numbers = #tpu.dot_dimension_numbers<[1], [0], [0], [1], [0, 0, 1, 1], [], []>} : vector<8x32xf32>, vector<32x96xf32>, vector<8x96xf32> -> vector<8x96xf32>
    %20 = arith.addf %19, %4 : vector<8x96xf32>
    %21 = vector.extract_strided_slice %20 {offsets = [0, 0], sizes = [8, 64], strides = [1, 1]} : vector<8x96xf32> to vector<8x64xf32>
    %22 = math.tanh %21 : vector<8x64xf32>
    %23 = vector.extract_strided_slice %20 {offsets = [0, 64], sizes = [8, 32], strides = [1, 1]} : vector<8x96xf32> to vector<8x32xf32>
    %24 = arith.negf %23 : vector<8x32xf32>
    %25 = math.exp %24 : vector<8x32xf32>
    %cst_17 = arith.constant 1.000000e+00 : f32
    %26 = vector.broadcast %cst_17 : f32 to vector<8x32xf32>
    %27 = arith.addf %26, %25 : vector<8x32xf32>
    %28 = arith.divf %26, %27 : vector<8x32xf32>
    %cst_18 = arith.constant dense<0.000000e+00> : vector<8x32xf32>
    %29 = tpu.matmul %22, %1, %cst_18 {dimension_numbers = #tpu.dot_dimension_numbers<[1], [0], [0], [1], [0, 0, 1, 1], [], []>} : vector<8x64xf32>, vector<64x32xf32>, vector<8x32xf32> -> vector<8x32xf32>
    %30 = arith.addf %29, %7 : vector<8x32xf32>
    %cst_19 = arith.constant 5.000000e-02 : f32
    %31 = vector.broadcast %cst_19 : f32 to vector<8x32xf32>
    %32 = arith.mulf %30, %31 : vector<8x32xf32>
    %33 = arith.addf %11, %32 : vector<8x32xf32>
    %34 = arith.mulf %28, %18 : vector<8x32xf32>
    %35 = arith.addf %33, %34 : vector<8x32xf32>
    %c1 = arith.constant 1 : index
    %c0_20 = arith.constant 0 : index
    %c0_21 = arith.constant 0 : index
    %36 = vector.load %arg8[%c1, %c0_20, %c0_21] : memref<8x8x32xf32, #tpu.memory_space<vmem>>, vector<1x8x32xf32>
    %37 = vector.shape_cast %36 : vector<1x8x32xf32> to vector<8x32xf32>
    %38 = vector.shape_cast %35 : vector<8x32xf32> to vector<1x8x32xf32>
    tpu.vector_store %arg8[%c1, %c0_20, %c0_21], %38 {strides = array<i32>} : memref<8x8x32xf32, #tpu.memory_space<vmem>>, vector<1x8x32xf32>,
    %c1_22 = arith.constant 1 : index
    %c0_23 = arith.constant 0 : index
    %c0_24 = arith.constant 0 : index
    %39 = vector.load %arg7[%c1_22, %c0_23, %c0_24] : memref<8x8x32xf32, #tpu.memory_space<vmem>>, vector<1x8x32xf32>
    %40 = vector.shape_cast %39 : vector<1x8x32xf32> to vector<8x32xf32>
    %cst_25 = arith.constant 0.223606795 : f32
    %41 = vector.broadcast %cst_25 : f32 to vector<8x32xf32>
    %42 = arith.mulf %40, %41 : vector<8x32xf32>
    %cst_26 = arith.constant dense<0.000000e+00> : vector<8x96xf32>
    %43 = tpu.matmul %35, %0, %cst_26 {dimension_numbers = #tpu.dot_dimension_numbers<[1], [0], [0], [1], [0, 0, 1, 1], [], []>} : vector<8x32xf32>, vector<32x96xf32>, vector<8x96xf32> -> vector<8x96xf32>
    %44 = arith.addf %43, %4 : vector<8x96xf32>
    %45 = vector.extract_strided_slice %44 {offsets = [0, 0], sizes = [8, 64], strides = [1, 1]} : vector<8x96xf32> to vector<8x64xf32>
    %46 = math.tanh %45 : vector<8x64xf32>
    %47 = vector.extract_strided_slice %44 {offsets = [0, 64], sizes = [8, 32], strides = [1, 1]} : vector<8x96xf32> to vector<8x32xf32>
    %48 = arith.negf %47 : vector<8x32xf32>
    %49 = math.exp %48 : vector<8x32xf32>
    %cst_27 = arith.constant 1.000000e+00 : f32
    %50 = vector.broadcast %cst_27 : f32 to vector<8x32xf32>
    %51 = arith.addf %50, %49 : vector<8x32xf32>
    %52 = arith.divf %50, %51 : vector<8x32xf32>
    %cst_28 = arith.constant dense<0.000000e+00> : vector<8x32xf32>
    %53 = tpu.matmul %46, %1, %cst_28 {dimension_numbers = #tpu.dot_dimension_numbers<[1], [0], [0], [1], [0, 0, 1, 1], [], []>} : vector<8x64xf32>, vector<64x32xf32>, vector<8x32xf32> -> vector<8x32xf32>
    %54 = arith.addf %53, %7 : vector<8x32xf32>
    %cst_29 = arith.constant 5.000000e-02 : f32
    %55 = vector.broadcast %cst_29 : f32 to vector<8x32xf32>
    %56 = arith.mulf %54, %55 : vector<8x32xf32>
    %57 = arith.addf %35, %56 : vector<8x32xf32>
    %58 = arith.mulf %52, %42 : vector<8x32xf32>
    %59 = arith.addf %57, %58 : vector<8x32xf32>
    %c2 = arith.constant 2 : index
    %c0_30 = arith.constant 0 : index
    %c0_31 = arith.constant 0 : index
    %60 = vector.load %arg8[%c2, %c0_30, %c0_31] : memref<8x8x32xf32, #tpu.memory_space<vmem>>, vector<1x8x32xf32>
    %61 = vector.shape_cast %60 : vector<1x8x32xf32> to vector<8x32xf32>
    %62 = vector.shape_cast %59 : vector<8x32xf32> to vector<1x8x32xf32>
    tpu.vector_store %arg8[%c2, %c0_30, %c0_31], %62 {strides = array<i32>} : memref<8x8x32xf32, #tpu.memory_space<vmem>>, vector<1x8x32xf32>,
    %c2_32 = arith.constant 2 : index
    %c0_33 = arith.constant 0 : index
    %c0_34 = arith.constant 0 : index
    %63 = vector.load %arg7[%c2_32, %c0_33, %c0_34] : memref<8x8x32xf32, #tpu.memory_space<vmem>>, vector<1x8x32xf32>
    %64 = vector.shape_cast %63 : vector<1x8x32xf32> to vector<8x32xf32>
    %cst_35 = arith.constant 0.223606795 : f32
    %65 = vector.broadcast %cst_35 : f32 to vector<8x32xf32>
    %66 = arith.mulf %64, %65 : vector<8x32xf32>
    %cst_36 = arith.constant dense<0.000000e+00> : vector<8x96xf32>
    %67 = tpu.matmul %59, %0, %cst_36 {dimension_numbers = #tpu.dot_dimension_numbers<[1], [0], [0], [1], [0, 0, 1, 1], [], []>} : vector<8x32xf32>, vector<32x96xf32>, vector<8x96xf32> -> vector<8x96xf32>
    %68 = arith.addf %67, %4 : vector<8x96xf32>
    %69 = vector.extract_strided_slice %68 {offsets = [0, 0], sizes = [8, 64], strides = [1, 1]} : vector<8x96xf32> to vector<8x64xf32>
    %70 = math.tanh %69 : vector<8x64xf32>
    %71 = vector.extract_strided_slice %68 {offsets = [0, 64], sizes = [8, 32], strides = [1, 1]} : vector<8x96xf32> to vector<8x32xf32>
    %72 = arith.negf %71 : vector<8x32xf32>
    %73 = math.exp %72 : vector<8x32xf32>
    %cst_37 = arith.constant 1.000000e+00 : f32
    %74 = vector.broadcast %cst_37 : f32 to vector<8x32xf32>
    %75 = arith.addf %74, %73 : vector<8x32xf32>
    %76 = arith.divf %74, %75 : vector<8x32xf32>
    %cst_38 = arith.constant dense<0.000000e+00> : vector<8x32xf32>
    %77 = tpu.matmul %70, %1, %cst_38 {dimension_numbers = #tpu.dot_dimension_numbers<[1], [0], [0], [1], [0, 0, 1, 1], [], []>} : vector<8x64xf32>, vector<64x32xf32>, vector<8x32xf32> -> vector<8x32xf32>
    %78 = arith.addf %77, %7 : vector<8x32xf32>
    %cst_39 = arith.constant 5.000000e-02 : f32
    %79 = vector.broadcast %cst_39 : f32 to vector<8x32xf32>
    %80 = arith.mulf %78, %79 : vector<8x32xf32>
    %81 = arith.addf %59, %80 : vector<8x32xf32>
    %82 = arith.mulf %76, %66 : vector<8x32xf32>
    %83 = arith.addf %81, %82 : vector<8x32xf32>
    %c3 = arith.constant 3 : index
    %c0_40 = arith.constant 0 : index
    %c0_41 = arith.constant 0 : index
    %84 = vector.load %arg8[%c3, %c0_40, %c0_41] : memref<8x8x32xf32, #tpu.memory_space<vmem>>, vector<1x8x32xf32>
    %85 = vector.shape_cast %84 : vector<1x8x32xf32> to vector<8x32xf32>
    %86 = vector.shape_cast %83 : vector<8x32xf32> to vector<1x8x32xf32>
    tpu.vector_store %arg8[%c3, %c0_40, %c0_41], %86 {strides = array<i32>} : memref<8x8x32xf32, #tpu.memory_space<vmem>>, vector<1x8x32xf32>,
    %c3_42 = arith.constant 3 : index
    %c0_43 = arith.constant 0 : index
    %c0_44 = arith.constant 0 : index
    %87 = vector.load %arg7[%c3_42, %c0_43, %c0_44] : memref<8x8x32xf32, #tpu.memory_space<vmem>>, vector<1x8x32xf32>
    %88 = vector.shape_cast %87 : vector<1x8x32xf32> to vector<8x32xf32>
    %cst_45 = arith.constant 0.223606795 : f32
    %89 = vector.broadcast %cst_45 : f32 to vector<8x32xf32>
    %90 = arith.mulf %88, %89 : vector<8x32xf32>
    %cst_46 = arith.constant dense<0.000000e+00> : vector<8x96xf32>
    %91 = tpu.matmul %83, %0, %cst_46 {dimension_numbers = #tpu.dot_dimension_numbers<[1], [0], [0], [1], [0, 0, 1, 1], [], []>} : vector<8x32xf32>, vector<32x96xf32>, vector<8x96xf32> -> vector<8x96xf32>
    %92 = arith.addf %91, %4 : vector<8x96xf32>
    %93 = vector.extract_strided_slice %92 {offsets = [0, 0], sizes = [8, 64], strides = [1, 1]} : vector<8x96xf32> to vector<8x64xf32>
    %94 = math.tanh %93 : vector<8x64xf32>
    %95 = vector.extract_strided_slice %92 {offsets = [0, 64], sizes = [8, 32], strides = [1, 1]} : vector<8x96xf32> to vector<8x32xf32>
    %96 = arith.negf %95 : vector<8x32xf32>
    %97 = math.exp %96 : vector<8x32xf32>
    %cst_47 = arith.constant 1.000000e+00 : f32
    %98 = vector.broadcast %cst_47 : f32 to vector<8x32xf32>
    %99 = arith.addf %98, %97 : vector<8x32xf32>
    %100 = arith.divf %98, %99 : vector<8x32xf32>
    %cst_48 = arith.constant dense<0.000000e+00> : vector<8x32xf32>
    %101 = tpu.matmul %94, %1, %cst_48 {dimension_numbers = #tpu.dot_dimension_numbers<[1], [0], [0], [1], [0, 0, 1, 1], [], []>} : vector<8x64xf32>, vector<64x32xf32>, vector<8x32xf32> -> vector<8x32xf32>
    %102 = arith.addf %101, %7 : vector<8x32xf32>
    %cst_49 = arith.constant 5.000000e-02 : f32
    %103 = vector.broadcast %cst_49 : f32 to vector<8x32xf32>
    %104 = arith.mulf %102, %103 : vector<8x32xf32>
    %105 = arith.addf %83, %104 : vector<8x32xf32>
    %106 = arith.mulf %100, %90 : vector<8x32xf32>
    %107 = arith.addf %105, %106 : vector<8x32xf32>
    %c4 = arith.constant 4 : index
    %c0_50 = arith.constant 0 : index
    %c0_51 = arith.constant 0 : index
    %108 = vector.load %arg8[%c4, %c0_50, %c0_51] : memref<8x8x32xf32, #tpu.memory_space<vmem>>, vector<1x8x32xf32>
    %109 = vector.shape_cast %108 : vector<1x8x32xf32> to vector<8x32xf32>
    %110 = vector.shape_cast %107 : vector<8x32xf32> to vector<1x8x32xf32>
    tpu.vector_store %arg8[%c4, %c0_50, %c0_51], %110 {strides = array<i32>} : memref<8x8x32xf32, #tpu.memory_space<vmem>>, vector<1x8x32xf32>,
    %c4_52 = arith.constant 4 : index
    %c0_53 = arith.constant 0 : index
    %c0_54 = arith.constant 0 : index
    %111 = vector.load %arg7[%c4_52, %c0_53, %c0_54] : memref<8x8x32xf32, #tpu.memory_space<vmem>>, vector<1x8x32xf32>
    %112 = vector.shape_cast %111 : vector<1x8x32xf32> to vector<8x32xf32>
    %cst_55 = arith.constant 0.223606795 : f32
    %113 = vector.broadcast %cst_55 : f32 to vector<8x32xf32>
    %114 = arith.mulf %112, %113 : vector<8x32xf32>
    %cst_56 = arith.constant dense<0.000000e+00> : vector<8x96xf32>
    %115 = tpu.matmul %107, %0, %cst_56 {dimension_numbers = #tpu.dot_dimension_numbers<[1], [0], [0], [1], [0, 0, 1, 1], [], []>} : vector<8x32xf32>, vector<32x96xf32>, vector<8x96xf32> -> vector<8x96xf32>
    %116 = arith.addf %115, %4 : vector<8x96xf32>
    %117 = vector.extract_strided_slice %116 {offsets = [0, 0], sizes = [8, 64], strides = [1, 1]} : vector<8x96xf32> to vector<8x64xf32>
    %118 = math.tanh %117 : vector<8x64xf32>
    %119 = vector.extract_strided_slice %116 {offsets = [0, 64], sizes = [8, 32], strides = [1, 1]} : vector<8x96xf32> to vector<8x32xf32>
    %120 = arith.negf %119 : vector<8x32xf32>
    %121 = math.exp %120 : vector<8x32xf32>
    %cst_57 = arith.constant 1.000000e+00 : f32
    %122 = vector.broadcast %cst_57 : f32 to vector<8x32xf32>
    %123 = arith.addf %122, %121 : vector<8x32xf32>
    %124 = arith.divf %122, %123 : vector<8x32xf32>
    %cst_58 = arith.constant dense<0.000000e+00> : vector<8x32xf32>
    %125 = tpu.matmul %118, %1, %cst_58 {dimension_numbers = #tpu.dot_dimension_numbers<[1], [0], [0], [1], [0, 0, 1, 1], [], []>} : vector<8x64xf32>, vector<64x32xf32>, vector<8x32xf32> -> vector<8x32xf32>
    %126 = arith.addf %125, %7 : vector<8x32xf32>
    %cst_59 = arith.constant 5.000000e-02 : f32
    %127 = vector.broadcast %cst_59 : f32 to vector<8x32xf32>
    %128 = arith.mulf %126, %127 : vector<8x32xf32>
    %129 = arith.addf %107, %128 : vector<8x32xf32>
    %130 = arith.mulf %124, %114 : vector<8x32xf32>
    %131 = arith.addf %129, %130 : vector<8x32xf32>
    %c5 = arith.constant 5 : index
    %c0_60 = arith.constant 0 : index
    %c0_61 = arith.constant 0 : index
    %132 = vector.load %arg8[%c5, %c0_60, %c0_61] : memref<8x8x32xf32, #tpu.memory_space<vmem>>, vector<1x8x32xf32>
    %133 = vector.shape_cast %132 : vector<1x8x32xf32> to vector<8x32xf32>
    %134 = vector.shape_cast %131 : vector<8x32xf32> to vector<1x8x32xf32>
    tpu.vector_store %arg8[%c5, %c0_60, %c0_61], %134 {strides = array<i32>} : memref<8x8x32xf32, #tpu.memory_space<vmem>>, vector<1x8x32xf32>,
    %c5_62 = arith.constant 5 : index
    %c0_63 = arith.constant 0 : index
    %c0_64 = arith.constant 0 : index
    %135 = vector.load %arg7[%c5_62, %c0_63, %c0_64] : memref<8x8x32xf32, #tpu.memory_space<vmem>>, vector<1x8x32xf32>
    %136 = vector.shape_cast %135 : vector<1x8x32xf32> to vector<8x32xf32>
    %cst_65 = arith.constant 0.223606795 : f32
    %137 = vector.broadcast %cst_65 : f32 to vector<8x32xf32>
    %138 = arith.mulf %136, %137 : vector<8x32xf32>
    %cst_66 = arith.constant dense<0.000000e+00> : vector<8x96xf32>
    %139 = tpu.matmul %131, %0, %cst_66 {dimension_numbers = #tpu.dot_dimension_numbers<[1], [0], [0], [1], [0, 0, 1, 1], [], []>} : vector<8x32xf32>, vector<32x96xf32>, vector<8x96xf32> -> vector<8x96xf32>
    %140 = arith.addf %139, %4 : vector<8x96xf32>
    %141 = vector.extract_strided_slice %140 {offsets = [0, 0], sizes = [8, 64], strides = [1, 1]} : vector<8x96xf32> to vector<8x64xf32>
    %142 = math.tanh %141 : vector<8x64xf32>
    %143 = vector.extract_strided_slice %140 {offsets = [0, 64], sizes = [8, 32], strides = [1, 1]} : vector<8x96xf32> to vector<8x32xf32>
    %144 = arith.negf %143 : vector<8x32xf32>
    %145 = math.exp %144 : vector<8x32xf32>
    %cst_67 = arith.constant 1.000000e+00 : f32
    %146 = vector.broadcast %cst_67 : f32 to vector<8x32xf32>
    %147 = arith.addf %146, %145 : vector<8x32xf32>
    %148 = arith.divf %146, %147 : vector<8x32xf32>
    %cst_68 = arith.constant dense<0.000000e+00> : vector<8x32xf32>
    %149 = tpu.matmul %142, %1, %cst_68 {dimension_numbers = #tpu.dot_dimension_numbers<[1], [0], [0], [1], [0, 0, 1, 1], [], []>} : vector<8x64xf32>, vector<64x32xf32>, vector<8x32xf32> -> vector<8x32xf32>
    %150 = arith.addf %149, %7 : vector<8x32xf32>
    %cst_69 = arith.constant 5.000000e-02 : f32
    %151 = vector.broadcast %cst_69 : f32 to vector<8x32xf32>
    %152 = arith.mulf %150, %151 : vector<8x32xf32>
    %153 = arith.addf %131, %152 : vector<8x32xf32>
    %154 = arith.mulf %148, %138 : vector<8x32xf32>
    %155 = arith.addf %153, %154 : vector<8x32xf32>
    %c6 = arith.constant 6 : index
    %c0_70 = arith.constant 0 : index
    %c0_71 = arith.constant 0 : index
    %156 = vector.load %arg8[%c6, %c0_70, %c0_71] : memref<8x8x32xf32, #tpu.memory_space<vmem>>, vector<1x8x32xf32>
    %157 = vector.shape_cast %156 : vector<1x8x32xf32> to vector<8x32xf32>
    %158 = vector.shape_cast %155 : vector<8x32xf32> to vector<1x8x32xf32>
    tpu.vector_store %arg8[%c6, %c0_70, %c0_71], %158 {strides = array<i32>} : memref<8x8x32xf32, #tpu.memory_space<vmem>>, vector<1x8x32xf32>,
    %c6_72 = arith.constant 6 : index
    %c0_73 = arith.constant 0 : index
    %c0_74 = arith.constant 0 : index
    %159 = vector.load %arg7[%c6_72, %c0_73, %c0_74] : memref<8x8x32xf32, #tpu.memory_space<vmem>>, vector<1x8x32xf32>
    %160 = vector.shape_cast %159 : vector<1x8x32xf32> to vector<8x32xf32>
    %cst_75 = arith.constant 0.223606795 : f32
    %161 = vector.broadcast %cst_75 : f32 to vector<8x32xf32>
    %162 = arith.mulf %160, %161 : vector<8x32xf32>
    %cst_76 = arith.constant dense<0.000000e+00> : vector<8x96xf32>
    %163 = tpu.matmul %155, %0, %cst_76 {dimension_numbers = #tpu.dot_dimension_numbers<[1], [0], [0], [1], [0, 0, 1, 1], [], []>} : vector<8x32xf32>, vector<32x96xf32>, vector<8x96xf32> -> vector<8x96xf32>
    %164 = arith.addf %163, %4 : vector<8x96xf32>
    %165 = vector.extract_strided_slice %164 {offsets = [0, 0], sizes = [8, 64], strides = [1, 1]} : vector<8x96xf32> to vector<8x64xf32>
    %166 = math.tanh %165 : vector<8x64xf32>
    %167 = vector.extract_strided_slice %164 {offsets = [0, 64], sizes = [8, 32], strides = [1, 1]} : vector<8x96xf32> to vector<8x32xf32>
    %168 = arith.negf %167 : vector<8x32xf32>
    %169 = math.exp %168 : vector<8x32xf32>
    %cst_77 = arith.constant 1.000000e+00 : f32
    %170 = vector.broadcast %cst_77 : f32 to vector<8x32xf32>
    %171 = arith.addf %170, %169 : vector<8x32xf32>
    %172 = arith.divf %170, %171 : vector<8x32xf32>
    %cst_78 = arith.constant dense<0.000000e+00> : vector<8x32xf32>
    %173 = tpu.matmul %166, %1, %cst_78 {dimension_numbers = #tpu.dot_dimension_numbers<[1], [0], [0], [1], [0, 0, 1, 1], [], []>} : vector<8x64xf32>, vector<64x32xf32>, vector<8x32xf32> -> vector<8x32xf32>
    %174 = arith.addf %173, %7 : vector<8x32xf32>
    %cst_79 = arith.constant 5.000000e-02 : f32
    %175 = vector.broadcast %cst_79 : f32 to vector<8x32xf32>
    %176 = arith.mulf %174, %175 : vector<8x32xf32>
    %177 = arith.addf %155, %176 : vector<8x32xf32>
    %178 = arith.mulf %172, %162 : vector<8x32xf32>
    %179 = arith.addf %177, %178 : vector<8x32xf32>
    %c7 = arith.constant 7 : index
    %c0_80 = arith.constant 0 : index
    %c0_81 = arith.constant 0 : index
    %180 = vector.load %arg8[%c7, %c0_80, %c0_81] : memref<8x8x32xf32, #tpu.memory_space<vmem>>, vector<1x8x32xf32>
    %181 = vector.shape_cast %180 : vector<1x8x32xf32> to vector<8x32xf32>
    %182 = vector.shape_cast %179 : vector<8x32xf32> to vector<1x8x32xf32>
    tpu.vector_store %arg8[%c7, %c0_80, %c0_81], %182 {strides = array<i32>} : memref<8x8x32xf32, #tpu.memory_space<vmem>>, vector<1x8x32xf32>,
    %c7_82 = arith.constant 7 : index
    %c0_83 = arith.constant 0 : index
    %c0_84 = arith.constant 0 : index
    %183 = vector.load %arg7[%c7_82, %c0_83, %c0_84] : memref<8x8x32xf32, #tpu.memory_space<vmem>>, vector<1x8x32xf32>
    %184 = vector.shape_cast %183 : vector<1x8x32xf32> to vector<8x32xf32>
    %cst_85 = arith.constant 0.223606795 : f32
    %185 = vector.broadcast %cst_85 : f32 to vector<8x32xf32>
    %186 = arith.mulf %184, %185 : vector<8x32xf32>
    %cst_86 = arith.constant dense<0.000000e+00> : vector<8x96xf32>
    %187 = tpu.matmul %179, %0, %cst_86 {dimension_numbers = #tpu.dot_dimension_numbers<[1], [0], [0], [1], [0, 0, 1, 1], [], []>} : vector<8x32xf32>, vector<32x96xf32>, vector<8x96xf32> -> vector<8x96xf32>
    %188 = arith.addf %187, %4 : vector<8x96xf32>
    %189 = vector.extract_strided_slice %188 {offsets = [0, 0], sizes = [8, 64], strides = [1, 1]} : vector<8x96xf32> to vector<8x64xf32>
    %190 = math.tanh %189 : vector<8x64xf32>
    %191 = vector.extract_strided_slice %188 {offsets = [0, 64], sizes = [8, 32], strides = [1, 1]} : vector<8x96xf32> to vector<8x32xf32>
    %192 = arith.negf %191 : vector<8x32xf32>
    %193 = math.exp %192 : vector<8x32xf32>
    %cst_87 = arith.constant 1.000000e+00 : f32
    %194 = vector.broadcast %cst_87 : f32 to vector<8x32xf32>
    %195 = arith.addf %194, %193 : vector<8x32xf32>
    %196 = arith.divf %194, %195 : vector<8x32xf32>
    %cst_88 = arith.constant dense<0.000000e+00> : vector<8x32xf32>
    %197 = tpu.matmul %190, %1, %cst_88 {dimension_numbers = #tpu.dot_dimension_numbers<[1], [0], [0], [1], [0, 0, 1, 1], [], []>} : vector<8x64xf32>, vector<64x32xf32>, vector<8x32xf32> -> vector<8x32xf32>
    %198 = arith.addf %197, %7 : vector<8x32xf32>
    %cst_89 = arith.constant 5.000000e-02 : f32
    %199 = vector.broadcast %cst_89 : f32 to vector<8x32xf32>
    %200 = arith.mulf %198, %199 : vector<8x32xf32>
    %201 = arith.addf %179, %200 : vector<8x32xf32>
    %202 = arith.mulf %196, %186 : vector<8x32xf32>
    %203 = arith.addf %201, %202 : vector<8x32xf32>
    %c0_90 = arith.constant 0 : index
    %c0_91 = arith.constant 0 : index
    %204 = vector.load %arg9[%c0_90, %c0_91] : memref<8x32xf32, #tpu.memory_space<vmem>>, vector<8x32xf32>
    tpu.vector_store %arg9[%c0_90, %c0_91], %203 {strides = array<i32>} : memref<8x32xf32, #tpu.memory_space<vmem>>, vector<8x32xf32>,
    return
  }
  func.func @transform_0(%arg0: i32, %arg1: i32) -> (i32, i32) {
    %c0_i32 = arith.constant 0 : i32
    %c0_i32_0 = arith.constant 0 : i32
    return %arg0, %c0_i32 : i32, i32
  }
  func.func @transform_1(%arg0: i32, %arg1: i32) -> (i32, i32) {
    %c0_i32 = arith.constant 0 : i32
    %c0_i32_0 = arith.constant 0 : i32
    %c0_i32_1 = arith.constant 0 : i32
    return %c0_i32, %c0_i32_0 : i32, i32
  }
  func.func @transform_2(%arg0: i32, %arg1: i32) -> (i32, i32) {
    %c0_i32 = arith.constant 0 : i32
    %c0_i32_0 = arith.constant 0 : i32
    %c0_i32_1 = arith.constant 0 : i32
    return %c0_i32, %c0_i32_0 : i32, i32
  }
  func.func @transform_3(%arg0: i32, %arg1: i32) -> (i32, i32) {
    %c0_i32 = arith.constant 0 : i32
    %c0_i32_0 = arith.constant 0 : i32
    %c0_i32_1 = arith.constant 0 : i32
    return %c0_i32, %c0_i32_0 : i32, i32
  }
  func.func @transform_4(%arg0: i32, %arg1: i32) -> (i32, i32) {
    %c0_i32 = arith.constant 0 : i32
    %c0_i32_0 = arith.constant 0 : i32
    %c0_i32_1 = arith.constant 0 : i32
    return %c0_i32, %c0_i32_0 : i32, i32
  }
  func.func @transform_5(%arg0: i32, %arg1: i32) -> (i32, i32, i32) {
    %c0_i32 = arith.constant 0 : i32
    %c0_i32_0 = arith.constant 0 : i32
    return %arg1, %arg0, %c0_i32 : i32, i32, i32
  }
  func.func @transform_6(%arg0: i32, %arg1: i32) -> (i32, i32, i32) {
    %c0_i32 = arith.constant 0 : i32
    %c0_i32_0 = arith.constant 0 : i32
    return %arg1, %arg0, %c0_i32 : i32, i32, i32
  }
}

</mosaic_0001>

<bundles_post_ra>
// kernel: tpu_custom_call.1
= control target key start
LH: loop header
LB: loop body
LE: loop exit
PB: predicated region body
PF: predicated region fallthrough
CT: control target
= control target key end

     0   :  { %11 = vsyncpa [#allocation4], 0  ;;  %s1819_s0 = inlined_call_operand.vmem [shape: f32[8,32], index: 0, kind: input, shape index: {}]   ;;  %s1820_s1 = inlined_call_operand.vmem [shape: f32[32,96], index: 1, kind: input, shape index: {}]   ;;  %s1821_s2 = inlined_call_operand.vmem [shape: f32[1,96], index: 2, kind: input, shape index: {}]   ;;  %s1822_s3 = inlined_call_operand.vmem [shape: f32[64,32], index: 3, kind: input, shape index: {}]   ;;  %s1823_s4 = inlined_call_operand.vmem [shape: f32[1,32], index: 4, kind: input, shape index: {}]   ;;  %s1824_s5 = inlined_call_operand.hbm [shape: f32[16,8,32], index: 5, kind: input, shape index: {}]   ;;  %s1825_s6 = inlined_call_operand.hbm [shape: f32[16,8,32], index: 6, kind: output, shape index: {}]  }
   0x1   :  { %13 = vsyncpa [#allocation4 + $0x1], 0 }
   0x2   :  { %14 = vsyncpa [#allocation5], 0 }
   0x3   :  { %16 = vsyncpa [#allocation5 + $0x1], 0  ;;  %s1446_s21 = smov 0   ;;  %s1448_s22 = smov 0  }
   0x4   :  { %s1450_s23 = smov 0   ;;  %s1452_s24 = smov 0  }
   0x5   :  { %s1454_s25 = smov 0   ;;  %s1456_s26 = smov 0  }
   0x6 LB: > { %s1118_s27 = sadd.s32 4294967295, %s1404_s26   ;;  %s1119_s28 = sadd.s32 4294967294, %s1404_s26   ;;  %s1404_s26 = sphi %s1456_s26, %s22_s26   ;;  %s1400_s25 = sphi %s1454_s25, %s1837_s25   ;;  %s1396_s24 = sphi %s1452_s24, %s1836_s24   ;;  %s1392_s23 = sphi %s1450_s23, %s1835_s23   ;;  %s1388_s22 = sphi %s1448_s22, %s1834_s22   ;;  %s1384_s21 = sphi %s1446_s21, %s1833_s21  }
   0x7   : > { %s31_s29 = sadd.s32 1, %s1400_s25  ;;  %s153_s30 = sadd.s32 1, %s1392_s23 }
   0x8   : > { %p32_p0 = scmp.ge.s32.totalorder %s31_s29, 2  ;;  %p160_p1 = scmp.ne.s32.totalorder %s1392_s23, %s1388_s22 }
   0x9   : > { %p161_p2 = scmp.eq.s32.totalorder %s1404_s26, 0  ;;  %p166_p3 = scmp.ne.s32.totalorder %s1388_s22, %s1384_s21 }
   0xa   : > { %s1839_s29 = smov (%p32_p0, %s31_s29), 0  ;;  %p167_p5 = scmp.eq.s32.totalorder %s1118_s27, 0 }
   0xb   : > { %1827 = sst [smem:[#allocation9_spill]] %s1839_s29  ;;  %p1487_p4 = por %p161_p2, %p160_p1 }
   0xc   : > { %s148_s8 = ssub.s32 %s1400_s25, %s1839_s29  ;;  %p192_p6 = scmp.eq.s32.totalorder %s1118_s27, 1 }
   0xd   : > { %p151_p7 = scmp.eq.s32.totalorder %s148_s8, 0  ;;  %p1493_p8 = por %p167_p5, %p166_p3 }
   0xe   : > { %p1497_p9 = por %p192_p6, %p160_p1  ;;  %p198_p10 = scmp.eq.s32.totalorder %s1119_s28, 1 }
   0xf   : > { %s1502_s11 = scalar_select %p151_p7, %s1392_s23, %s153_s30  }
  0x10   : > { %p1504_p11 = por %p198_p10, %p166_p3  ;;  %p1122_p12 = scmp.ge.s32.totalorder %s1404_s26, 2 }
  0x11   : > { %p1187_p13 = scmp.lt.s32.totalorder %s1404_s26, 2  ;;  %s237_s13 = sand.u32 1, %s1392_s23  }
  0x12   : > { %s1123_s14 = sshll.u32 %s237_s13, 6  ;;  %s1173_s15 = sshll.u32 %s1400_s25, 6 }
  0x13   : > { %s247_s18 = scalar_lea.hbm %s1824_s5, %s1173_s15  ;;  %s241_s19 = scalar_lea.vmem [#allocation3], %s1123_s14 }
  0x14   : > { %s250_s20 = sshll.u32 %s241_s19, 4  ;;  %s248_s27 = sshll.u32 %s247_s18, 4  ;;  %s251_s20 = int_to_ptr.vmem [resolvable:$true] %s250_s20  ;;  %s249_s27 = int_to_ptr.hbm [resolvable:$true] %s248_s27 }
  0x15   : > { %p1180_p0 = pnand %p1187_p13, %p1487_p4  ;;  %p1126_p1 = scmp.ge.s32.totalorder %s1404_s26, 1 }
  0x16   : > { %s238_s28 = scalar_lea.sflag [#allocation4], %s237_s13  ;;  %s1406_s30 = smov 128  }
  0x17   : > { %s1407_s8 = smov 8   ;;  %p258_p2 = scmp.lt.s32.totalorder %s1404_s26, 3 }
  0x18   : > { %1182 = dma.hbm_to_vmem [thread:$0]  (!%p1180_p0), %s249_s27, 1024, %s251_s20, %s238_s28, %s1406_s30, %s1406_s30, %s1407_s8  }
  0x19   : > { %p259_p3 = pnand %p1126_p1, %p258_p2 }
  0x1a   : > { %s1520_s29 = sand.u32 (!%p259_p3), 1, %s1388_s22  }
  0x1b   : > { %262 = sbr.rel (%p259_p3) target bundleno = 2274 (0x8e2), region = 44  ;;  %s1127_s14 = sshll.u32 (!%p259_p3), %s1520_s29, 6 }
  0x1c   : > { %s265_s15 = scalar_lea.sflag (!%p259_p3), [#allocation4], %s1520_s29  ;;  %s1524_s16 = scalar_lea.vmem (!%p259_p3), [#allocation3], %s1127_s14 }
  0x20   : > { %1375 = dma.done.wait (%p1493_p8), %s265_s15, 1024  }
  0x21   : > { %1377 = vsyncadd (%p1493_p8), %s265_s15, 4294966272  ;;  %v1533_v0 = vld [vmem:[%s1820_s1] sm:$0xff]  ;;  %v1538_v1 = vld [vmem:[%s1820_s1 + $0x8] sm:$0xff]  ;;  %s1600_s19 = scalar_lea.vmem [#allocation6], %s1127_s14  ;;  %p1129_p4 = scmp.ne.s32.totalorder %s1396_s24, 0 }
  0x22   : > { %v1543_v2 = vld [vmem:[%s1820_s1 + $0x10] sm:$0xff]  ;;  %v1548_v3 = vld [vmem:[%s1820_s1 + $0x18] sm:$0xff]  ;;  %v1553_v4 = vld [vmem:[%s1822_s3] sm:$0xff] }
  0x23   : > { %v1558_v5 = vld [vmem:[%s1822_s3 + $0x8] sm:$0xff]  ;;  %v1563_v6 = vld [vmem:[%s1822_s3 + $0x10] sm:$0xff]  ;;  %v1568_v7 = vld [vmem:[%s1822_s3 + $0x18] sm:$0xff]  ;;  %331 = sbr.rel (%p1129_p4) target bundleno = 42 (0x2a), region = 52 }
  0x24   : > { %v1573_v8 = vld [vmem:[%s1822_s3 + $0x20] sm:$0xff]  ;;  %v1578_v9 = vld [vmem:[%s1822_s3 + $0x28] sm:$0xff]  ;;  %v1583_v10 = vld [vmem:[%s1822_s3 + $0x30] sm:$0xff] }
  0x25   : > { %v1588_v11 = vld [vmem:[%s1822_s3 + $0x38] sm:$0xff]  ;;  %v1593_v12 = vld [vmem:[%s1821_s2] ss:$0 sm:$0xff] }
  0x26   : > { %v1598_v13 = vld [vmem:[%s1823_s4] ss:$0 sm:$0xff] }
  0x28   : > { %v332_v14 = vld [vmem:[%s1819_s0] sm:$0xff]  ;;  %vm333_vm0 = vcmask 261120  }
  0x29   : > { %334 = vst.msk [vmem:[#allocation2] sm:$0xff] %vm333_vm0, %v332_v14 }
  0x2a PF: > { %355 = vmatpush.msra.mxu0 %v1548_v3  ;;  %vm336_vm1 = vcmask 261120   ;;  %v338_v16 = vld [vmem:[%s1524_s16] sm:$0xff]  ;;  %395 = vmatpush.msra.mxu1 %v1588_v11  ;;  %s1408_s14 = smov 64   ;;  %vm383_vm2 = vcmask 523264   ;;  %v1134_v36 = vld [vmem:[%s1524_s16 + $0x8] sm:$0xff]  ;;  %v1139_v62 = vld [vmem:[%s1524_s16 + $0x10] sm:$0xff] }
  0x2b   : > { %v339_v17 = vmul.f32 0.2236068, %v338_v16  ;;  %439 = vmatpush.msra.mxu2 %v1548_v3  ;;  %478 = vmatpush.msra.mxu3 %v1588_v11  ;;  %v423_v37 = vmul.f32 0.2236068, %v1134_v36  ;;  %v506_v63 = vmul.f32 0.2236068, %v1139_v62 }
  0x2c   : > { %356 = vmatpush.msra.mxu0 %v1543_v2  ;;  %396 = vmatpush.msra.mxu1 %v1583_v10  ;;  %s1015_s8 = sshll.u32 %s1600_s19, 4  ;;  %s1002_s7 = scalar_lea.sflag [#allocation5], %s1520_s29  ;;  %s1016_s8 = int_to_ptr.vmem [resolvable:$true] %s1015_s8 }
  0x2d   : > { %410 = vrot.lane.b32.xlu0 %v339_v17, %s1408_s14  ;;  %440 = vmatpush.msra.mxu2 %v1543_v2  ;;  %s1342_s20 = scalar_lea.hbm %s1825_s6, 128 }
  0x2e   : > { %357 = vmatpush.msra.mxu0 %v1538_v1  ;;  %397 = vmatpush.msra.mxu1 %v1578_v9 }
  0x2f   : > { %441 = vmatpush.msra.mxu2 %v1538_v1  ;;  %479 = vmatpush.msra.mxu3 %v1583_v10 }
  0x30   : > { %v1607_v15 = vld [vmem:[#allocation2] sm:$0xff]  ;;  %358 = vmatpush.msra.mxu0 %v1533_v0  ;;  %398 = vmatpush.msra.mxu1 %v1573_v8 }
  0x31   : > { %337 = vst.msk [vmem:[%s1600_s19] sm:$0xff] %vm336_vm1, %v1607_v15  ;;  %1130 = vmatmul.msk.f32.vlgmr.msra.gmra.mxu0 %vm336_vm1, %v1607_v15  ;;  %442 = vmatpush.msra.mxu2 %v1533_v0 }
  0x32   : > { %399 = vmatpush.msra.mxu1 %v1568_v7  ;;  %480 = vmatpush.msra.mxu3 %v1578_v9 }
  0x33   : > { %522 = vmatpush.msrb.mxu0 %v1548_v3  ;;  %561 = vmatpush.msrb.mxu2 %v1588_v11 }
  0x34   : > { %400 = vmatpush.msra.mxu1 %v1563_v6  ;;  %481 = vmatpush.msra.mxu3 %v1573_v8 }
  0x35   : > { %523 = vmatpush.msrb.mxu0 %v1543_v2  ;;  %562 = vmatpush.msrb.mxu2 %v1583_v10 }
  0x36   : > { %401 = vmatpush.msra.mxu1 %v1558_v5  ;;  %482 = vmatpush.msra.mxu3 %v1568_v7 }
  0x37   : > { %524 = vmatpush.msrb.mxu0 %v1538_v1  ;;  %563 = vmatpush.msrb.mxu2 %v1578_v9 }
  0x38   : > { %402 = vmatpush.msra.mxu1 %v1553_v4  ;;  %483 = vmatpush.msra.mxu3 %v1563_v6 }
  0x39   : > { %525 = vmatpush.msrb.mxu0 %v1533_v0  ;;  %564 = vmatpush.msrb.mxu2 %v1573_v8 }
  0x3a   : > { %484 = vmatpush.msra.mxu3 %v1558_v5  ;;  %644 = vmatpush.msrb.mxu1 %v1588_v11 }
  0x3b   : > { %605 = vmatpush.msra.mxu0 %v1548_v3  ;;  %565 = vmatpush.msrb.mxu2 %v1568_v7 }
  0x3c   : > { %485 = vmatpush.msra.mxu3 %v1553_v4  ;;  %645 = vmatpush.msrb.mxu1 %v1583_v10 }
  0x3d   : > { %606 = vmatpush.msra.mxu0 %v1543_v2  ;;  %566 = vmatpush.msrb.mxu2 %v1563_v6 }
  0x3e   : > { %688 = vmatpush.msrb.mxu3 %v1548_v3  ;;  %646 = vmatpush.msrb.mxu1 %v1578_v9 }
  0x3f   : > { %607 = vmatpush.msra.mxu0 %v1538_v1  ;;  %567 = vmatpush.msrb.mxu2 %v1558_v5 }
  0x40   : > { %689 = vmatpush.msrb.mxu3 %v1543_v2  ;;  %647 = vmatpush.msrb.mxu1 %v1573_v8 }
  0x41   : > { %608 = vmatpush.msra.mxu0 %v1533_v0  ;;  %568 = vmatpush.msrb.mxu2 %v1553_v4 }
  0x42   : > { %690 = vmatpush.msrb.mxu3 %v1538_v1  ;;  %648 = vmatpush.msrb.mxu1 %v1568_v7 }
  0x43   : > { %493 = vrot.lane.b32.xlu1 %v423_v37, %s1408_s14  ;;  %576 = vrot.lane.b32.xlu2 %v506_v63, %s1408_s14 }
  0x44   : > { %691 = vmatpush.msrb.mxu3 %v1533_v0  ;;  %649 = vmatpush.msrb.mxu1 %v1563_v6 }
  0x46   : > { %650 = vmatpush.msrb.mxu1 %v1558_v5 }
  0x48   : > { %651 = vmatpush.msrb.mxu1 %v1553_v4 }
  0x9f   : > { %v411_v31 = vpop.permute.xlu0 %410 }
  0xae   : > { %v360_v18 = vpop.f32.mrf.mxu0 }
  0xaf   : > { %v361_v19 = vadd.f32 %v1593_v12, %v360_v18 }
  0xb1   : > { %1244 = vtanh.f32 %v361_v19  ;;  %v1131_v20 = vmul.f32 -1.442695, %v361_v19 }
  0xb3   : > { %1246 = vpow2.f32 %v1131_v20 }
  0xb5   : > { %v494_v57 = vpop.permute.xlu1 %493 }
  0xb7   : > { %v1245_v21 = vpop.eup %1244 }
  0xb8   : > { %1132 = vmatmul.msk.f32.vlgmr.msra.gmra.mxu1 %vm383_vm2, %v1245_v21 }
  0xb9   : > { %v1247_v22 = vpop.eup %1246  ;;  %976 = vmatpush.msra.mxu1 %v1588_v11 }
  0xba   : > { %v367_v23 = vadd.f32 1.0, %v1247_v22 }
  0xbb   : > { %977 = vmatpush.msra.mxu1 %v1583_v10 }
  0xbc   : > { %1248 = vrcp.f32 %v367_v23  ;;  %v379_v27 = vand.u32 2147483648, %v367_v23  ;;  %v377_v29 = vand.u32 2147483647, %v367_v23  ;;  %vm373_vm4 = vweird.f32 %v367_v23 }
  0xbd   : > { %978 = vmatpush.msra.mxu1 %v1578_v9 }
  0xbe   : > { %v380_v32 = vor.u32 1.1754944e-38, %v379_v27  ;;  %vm378_vm6 = vcmp.eq.f32.partialorder %v377_v29, 8.507059e+37 }
  0xbf   : > { %979 = vmatpush.msra.mxu1 %v1573_v8 }
  0xc1   : > { %980 = vmatpush.msra.mxu1 %v1568_v7 }
  0xc2   : > { %v1249_v24 = vpop.eup %1248 }
  0xc3   : > { %v369_v25 = vmul.f32 %v1249_v24, %v367_v23  ;;  %981 = vmatpush.msra.mxu1 %v1563_v6  ;;  %vm374_vm3 = vweird.f32 %v1249_v24 }
  0xc4   : > { %vm375_vm5 = vmor %vm373_vm4, %vm374_vm3 }
  0xc5   : > { %v370_v26 = vsub.f32 1.0, %v369_v25  ;;  %982 = vmatpush.msra.mxu1 %v1558_v5 }
  0xc7   : > { %v371_v28 = vmul.f32 %v1249_v24, %v370_v26  ;;  %983 = vmatpush.msra.mxu1 %v1553_v4 }
  0xc9   : > { %v372_v30 = vadd.f32 %v1249_v24, %v371_v28 }
  0xcb   : > { %v376_v33 = vsel %vm375_vm5, %v1249_v24, %v372_v30 }
  0xcc   : > { %v381_v34 = vsel %vm378_vm6, %v380_v32, %v376_v33 }
  0xcd   : > { %v413_v35 = vmul.f32 %v411_v31, %v381_v34 }
  0xcf   : > { %415 = vrot.lane.b32.xlu0 %v413_v35, %s1408_s14 }
 0x135   : > { %v404_v38 = vpop.f32.mrf.mxu1 }
 0x136   : > { %v405_v39 = vadd.f32 %v1598_v13, %v404_v38 }
 0x138   : > { %v407_v40 = vmul.f32 0.05, %v405_v39 }
 0x13a   : > { %v408_v41 = vadd.f32 %v407_v40, %v1607_v15 }
 0x141   : > { %v416_v42 = vpop.permute.xlu0 %415 }
 0x142   : > { %v418_v43 = vadd.f32 %v416_v42, %v408_v41 }
 0x144   : > { %1133 = vst.msk [vmem:[%s1600_s19 + $0x8] sm:$0xff] %vm336_vm1, %v418_v43  ;;  %1135 = vmatmul.msk.f32.vlgmr.msra.gmra.mxu2 %vm336_vm1, %v418_v43 }
 0x145   : > { %771 = vmatpush.msra.mxu2 %v1548_v3 }
 0x147   : > { %772 = vmatpush.msra.mxu2 %v1543_v2 }
 0x149   : > { %773 = vmatpush.msra.mxu2 %v1538_v1 }
 0x14b   : > { %774 = vmatpush.msra.mxu2 %v1533_v0 }
 0x1c7   : > { %v444_v44 = vpop.f32.mrf.mxu2 }
 0x1c8   : > { %v445_v45 = vadd.f32 %v1593_v12, %v444_v44 }
 0x1ca   : > { %1250 = vtanh.f32 %v445_v45  ;;  %v1136_v46 = vmul.f32 -1.442695, %v445_v45 }
 0x1cc   : > { %1252 = vpow2.f32 %v1136_v46 }
 0x1d0   : > { %v1251_v47 = vpop.eup %1250 }
 0x1d1   : > { %1137 = vmatmul.msk.f32.vlgmr.msra.gmra.mxu3 %vm383_vm2, %v1251_v47 }
 0x1d2   : > { %v1253_v48 = vpop.eup %1252  ;;  %810 = vmatpush.msra.mxu3 %v1588_v11 }
 0x1d3   : > { %v451_v49 = vadd.f32 1.0, %v1253_v48 }
 0x1d4   : > { %811 = vmatpush.msra.mxu3 %v1583_v10 }
 0x1d5   : > { %1254 = vrcp.f32 %v451_v49  ;;  %v463_v53 = vand.u32 2147483648, %v451_v49  ;;  %v461_v55 = vand.u32 2147483647, %v451_v49  ;;  %vm457_vm8 = vweird.f32 %v451_v49 }
 0x1d6   : > { %812 = vmatpush.msra.mxu3 %v1578_v9 }
 0x1d7   : > { %v464_v58 = vor.u32 1.1754944e-38, %v463_v53  ;;  %vm462_vm10 = vcmp.eq.f32.partialorder %v461_v55, 8.507059e+37 }
 0x1d8   : > { %813 = vmatpush.msra.mxu3 %v1573_v8 }
 0x1da   : > { %814 = vmatpush.msra.mxu3 %v1568_v7 }
 0x1db   : > { %v1255_v50 = vpop.eup %1254 }
 0x1dc   : > { %v453_v51 = vmul.f32 %v1255_v50, %v451_v49  ;;  %815 = vmatpush.msra.mxu3 %v1563_v6  ;;  %vm458_vm7 = vweird.f32 %v1255_v50 }
 0x1dd   : > { %vm459_vm9 = vmor %vm457_vm8, %vm458_vm7 }
 0x1de   : > { %v454_v52 = vsub.f32 1.0, %v453_v51  ;;  %816 = vmatpush.msra.mxu3 %v1558_v5 }
 0x1e0   : > { %v455_v54 = vmul.f32 %v1255_v50, %v454_v52  ;;  %817 = vmatpush.msra.mxu3 %v1553_v4 }
 0x1e2   : > { %v456_v56 = vadd.f32 %v1255_v50, %v455_v54 }
 0x1e4   : > { %v460_v59 = vsel %vm459_vm9, %v1255_v50, %v456_v56  ;;  %v1149_v56 = vld [vmem:[%s1524_s16 + $0x20] sm:$0xff] }
 0x1e5   : > { %v465_v60 = vsel %vm462_vm10, %v464_v58, %v460_v59 }
 0x1e6   : > { %v496_v61 = vmul.f32 %v494_v57, %v465_v60  ;;  %v672_v57 = vmul.f32 0.2236068, %v1149_v56 }
 0x1e8   : > { %498 = vrot.lane.b32.xlu1 %v496_v61, %s1408_s14 }
 0x254   : > { %v487_v14 = vpop.f32.mrf.mxu3 }
 0x255   : > { %v488_v15 = vadd.f32 %v1598_v13, %v487_v14 }
 0x257   : > { %v490_v16 = vmul.f32 0.05, %v488_v15 }
 0x259   : > { %v491_v17 = vadd.f32 %v490_v16, %v418_v43 }
 0x25a   : > { %v499_v18 = vpop.permute.xlu1 %498 }
 0x25b   : > { %v501_v19 = vadd.f32 %v499_v18, %v491_v17 }
 0x25d   : > { %1138 = vst.msk [vmem:[%s1600_s19 + $0x10] sm:$0xff] %vm336_vm1, %v501_v19  ;;  %1140 = vmatmul.msk.f32.vlgmr.msrb.gmra.mxu0 %vm336_vm1, %v501_v19 }
 0x25e   : > { %727 = vmatpush.msrb.mxu0 %v1588_v11 }
 0x260   : > { %728 = vmatpush.msrb.mxu0 %v1583_v10 }
 0x262   : > { %729 = vmatpush.msrb.mxu0 %v1578_v9 }
 0x264   : > { %730 = vmatpush.msrb.mxu0 %v1573_v8 }
 0x266   : > { %731 = vmatpush.msrb.mxu0 %v1568_v7 }
 0x268   : > { %732 = vmatpush.msrb.mxu0 %v1563_v6 }
 0x26a   : > { %733 = vmatpush.msrb.mxu0 %v1558_v5 }
 0x26c   : > { %734 = vmatpush.msrb.mxu0 %v1553_v4 }
 0x2da   : > { %v527_v20 = vpop.f32.mrf.mxu0 }
 0x2db   : > { %v528_v21 = vadd.f32 %v1593_v12, %v527_v20 }
 0x2dd   : > { %1256 = vtanh.f32 %v528_v21  ;;  %v1141_v22 = vmul.f32 -1.442695, %v528_v21 }
 0x2df   : > { %1258 = vpow2.f32 %v1141_v22 }
 0x2e3   : > { %v1257_v23 = vpop.eup %1256 }
 0x2e4   : > { %1142 = vmatmul.msk.f32.vlgmr.msrb.gmra.mxu2 %vm383_vm2, %v1257_v23 }
 0x2e5   : > { %v1259_v24 = vpop.eup %1258  ;;  %893 = vmatpush.msrb.mxu2 %v1588_v11 }
 0x2e6   : > { %v534_v25 = vadd.f32 1.0, %v1259_v24 }
 0x2e7   : > { %894 = vmatpush.msrb.mxu2 %v1583_v10 }
 0x2e8   : > { %1260 = vrcp.f32 %v534_v25  ;;  %v546_v29 = vand.u32 2147483648, %v534_v25  ;;  %v544_v30 = vand.u32 2147483647, %v534_v25  ;;  %vm540_vm12 = vweird.f32 %v534_v25 }
 0x2e9   : > { %895 = vmatpush.msrb.mxu2 %v1578_v9  ;;  %v577_v9 = vpop.permute.xlu2 %576 }
 0x2ea   : > { %vm545_vm14 = vcmp.eq.f32.partialorder %v544_v30, 8.507059e+37 }
 0x2eb   : > { %896 = vmatpush.msrb.mxu2 %v1573_v8 }
 0x2ed   : > { %897 = vmatpush.msrb.mxu2 %v1568_v7  ;;  %v547_v7 = vor.u32 1.1754944e-38, %v546_v29 }
 0x2ee   : > { %v1261_v26 = vpop.eup %1260 }
 0x2ef   : > { %v536_v27 = vmul.f32 %v1261_v26, %v534_v25  ;;  %898 = vmatpush.msrb.mxu2 %v1563_v6  ;;  %vm541_vm11 = vweird.f32 %v1261_v26 }
 0x2f0   : > { %vm542_vm13 = vmor %vm540_vm12, %vm541_vm11 }
 0x2f1   : > { %v537_v28 = vsub.f32 1.0, %v536_v27  ;;  %899 = vmatpush.msrb.mxu2 %v1558_v5  ;;  %v1144_v5 = vld [vmem:[%s1524_s16 + $0x18] sm:$0xff] }
 0x2f2   : > { %v589_v32 = vmul.f32 0.2236068, %v1144_v5 }
 0x2f3   : > { %v538_v11 = vmul.f32 %v1261_v26, %v537_v28  ;;  %900 = vmatpush.msrb.mxu2 %v1553_v4  ;;  %v1154_v28 = vld [vmem:[%s1524_s16 + $0x28] sm:$0xff] }
 0x2f4   : > { %659 = vrot.lane.b32.xlu0 %v589_v32, %s1408_s14  ;;  %v755_v29 = vmul.f32 0.2236068, %v1154_v28 }
 0x2f5   : > { %v539_v10 = vadd.f32 %v1261_v26, %v538_v11 }
 0x2f7   : > { %v543_v8 = vsel %vm542_vm13, %v1261_v26, %v539_v10 }
 0x2f8   : > { %v548_v31 = vsel %vm545_vm14, %v547_v7, %v543_v8 }
 0x2f9   : > { %v579_v6 = vmul.f32 %v577_v9, %v548_v31 }
 0x2fb   : > { %581 = vrot.lane.b32.xlu2 %v579_v6, %s1408_s14 }
 0x303   : > { %742 = vrot.lane.b32.xlu2 %v672_v57, %s1408_s14 }
 0x355   : > { %v582_v36 = vpop.permute.xlu2 %581 }
 0x35d   : > { %v743_v23 = vpop.permute.xlu2 %742 }
 0x366   : > { %v660_v51 = vpop.permute.xlu0 %659 }
 0x367   : > { %v570_v33 = vpop.f32.mrf.mxu2 }
 0x368   : > { %v571_v34 = vadd.f32 %v1598_v13, %v570_v33 }
 0x36a   : > { %v573_v4 = vmul.f32 0.05, %v571_v34 }
 0x36c   : > { %v574_v35 = vadd.f32 %v573_v4, %v501_v19 }
 0x36e   : > { %v584_v37 = vadd.f32 %v582_v36, %v574_v35 }
 0x370   : > { %1143 = vst.msk [vmem:[%s1600_s19 + $0x18] sm:$0xff] %vm336_vm1, %v584_v37  ;;  %1145 = vmatmul.msk.f32.vlgmr.msra.gmra.mxu0 %vm336_vm1, %v584_v37 }
 0x371   : > { %937 = vmatpush.msra.mxu0 %v1548_v3 }
 0x373   : > { %938 = vmatpush.msra.mxu0 %v1543_v2 }
 0x375   : > { %939 = vmatpush.msra.mxu0 %v1538_v1 }
 0x377   : > { %940 = vmatpush.msra.mxu0 %v1533_v0 }
 0x3ed   : > { %v610_v38 = vpop.f32.mrf.mxu0 }
 0x3ee   : > { %v611_v39 = vadd.f32 %v1593_v12, %v610_v38 }
 0x3f0   : > { %1262 = vtanh.f32 %v611_v39  ;;  %v1146_v40 = vmul.f32 -1.442695, %v611_v39 }
 0x3f2   : > { %1264 = vpow2.f32 %v1146_v40 }
 0x3f6   : > { %v1263_v41 = vpop.eup %1262 }
 0x3f7   : > { %1147 = vmatmul.msk.f32.vlgmr.msrb.gmra.mxu1 %vm383_vm2, %v1263_v41 }
 0x3f8   : > { %v1265_v42 = vpop.eup %1264 }
 0x3f9   : > { %v617_v43 = vadd.f32 1.0, %v1265_v42 }
 0x3fb   : > { %1266 = vrcp.f32 %v617_v43  ;;  %v629_v47 = vand.u32 2147483648, %v617_v43  ;;  %v627_v49 = vand.u32 2147483647, %v617_v43  ;;  %vm623_vm0 = vweird.f32 %v617_v43 }
 0x3fd   : > { %v630_v52 = vor.u32 1.1754944e-38, %v629_v47  ;;  %vm628_vm4 = vcmp.eq.f32.partialorder %v627_v49, 8.507059e+37 }
 0x401   : > { %v1267_v44 = vpop.eup %1266 }
 0x402   : > { %v619_v45 = vmul.f32 %v1267_v44, %v617_v43  ;;  %vm624_vm15 = vweird.f32 %v1267_v44 }
 0x403   : > { %vm625_vm3 = vmor %vm623_vm0, %vm624_vm15 }
 0x404   : > { %v620_v46 = vsub.f32 1.0, %v619_v45 }
 0x406   : > { %v621_v48 = vmul.f32 %v1267_v44, %v620_v46  ;;  %v1159_v46 = vld [vmem:[%s1524_s16 + $0x30] sm:$0xff] }
 0x407   : > { %v838_v47 = vmul.f32 0.2236068, %v1159_v46 }
 0x408   : > { %v622_v50 = vadd.f32 %v1267_v44, %v621_v48 }
 0x40a   : > { %v626_v53 = vsel %vm625_vm3, %v1267_v44, %v622_v50 }
 0x40b   : > { %v631_v54 = vsel %vm628_vm4, %v630_v52, %v626_v53 }
 0x40c   : > { %v662_v55 = vmul.f32 %v660_v51, %v631_v54 }
 0x40e   : > { %664 = vrot.lane.b32.xlu1 %v662_v55, %s1408_s14 }
 0x416   : > { %825 = vrot.lane.b32.xlu1 %v755_v29, %s1408_s14 }
 0x474   : > { %v653_v58 = vpop.f32.mrf.mxu1 }
 0x475   : > { %v654_v59 = vadd.f32 %v1598_v13, %v653_v58 }
 0x477   : > { %v656_v60 = vmul.f32 0.05, %v654_v59 }
 0x479   : > { %v657_v61 = vadd.f32 %v656_v60, %v584_v37 }
 0x480   : > { %v665_v62 = vpop.permute.xlu1 %664 }
 0x481   : > { %v667_v63 = vadd.f32 %v665_v62, %v657_v61 }
 0x483   : > { %1148 = vst.msk [vmem:[%s1600_s19 + $0x20] sm:$0xff] %vm336_vm1, %v667_v63  ;;  %1150 = vmatmul.msk.f32.vlgmr.msrb.gmra.mxu3 %vm336_vm1, %v667_v63 }
 0x484   : > { %854 = vmatpush.msrb.mxu3 %v1548_v3 }
 0x486   : > { %855 = vmatpush.msrb.mxu3 %v1543_v2 }
 0x488   : > { %856 = vmatpush.msrb.mxu3 %v1538_v1  ;;  %v826_v41 = vpop.permute.xlu1 %825 }
 0x48a   : > { %857 = vmatpush.msrb.mxu3 %v1533_v0 }
 0x506   : > { %v693_v14 = vpop.f32.mrf.mxu3 }
 0x507   : > { %v694_v15 = vadd.f32 %v1593_v12, %v693_v14 }
 0x509   : > { %1268 = vtanh.f32 %v694_v15  ;;  %v1151_v16 = vmul.f32 -1.442695, %v694_v15 }
 0x50b   : > { %1270 = vpow2.f32 %v1151_v16 }
 0x50f   : > { %v1269_v17 = vpop.eup %1268 }
 0x510   : > { %1152 = vmatmul.msk.f32.vlgmr.msrb.gmra.mxu0 %vm383_vm2, %v1269_v17 }
 0x511   : > { %v1271_v18 = vpop.eup %1270 }
 0x512   : > { %v700_v19 = vadd.f32 1.0, %v1271_v18 }
 0x514   : > { %1272 = vrcp.f32 %v700_v19  ;;  %v712_v21 = vand.u32 2147483648, %v700_v19  ;;  %v710_v0 = vand.u32 2147483647, %v700_v19  ;;  %vm706_vm6 = vweird.f32 %v700_v19 }
 0x516   : > { %v713_v24 = vor.u32 1.1754944e-38, %v712_v21  ;;  %vm711_vm8 = vcmp.eq.f32.partialorder %v710_v0, 8.507059e+37 }
 0x51a   : > { %v1273_v20 = vpop.eup %1272 }
 0x51b   : > { %v702_v3 = vmul.f32 %v1273_v20, %v700_v19  ;;  %vm707_vm5 = vweird.f32 %v1273_v20 }
 0x51c   : > { %vm708_vm7 = vmor %vm706_vm6, %vm707_vm5 }
 0x51d   : > { %v703_v2 = vsub.f32 1.0, %v702_v3 }
 0x51f   : > { %v704_v1 = vmul.f32 %v1273_v20, %v703_v2  ;;  %v1164_v2 = vld [vmem:[%s1524_s16 + $0x38] sm:$0xff]  ;;  %s1174_s16 = sshll.u32 %s1396_s24, 6 }
 0x520   : > { %v921_v21 = vmul.f32 0.2236068, %v1164_v2  ;;  %s1014_s30 = scalar_lea.hbm %s1825_s6, %s1174_s16 }
 0x521   : > { %v705_v22 = vadd.f32 %v1273_v20, %v704_v1  ;;  %s1017_s15 = sshll.u32 %s1014_s30, 4  ;;  %s1018_s15 = int_to_ptr.hbm [resolvable:$true] %s1017_s15 }
 0x522   : > { %s1336_s13 = sshra.s32 %s1018_s15, 4  ;;  %s1337_s13 = int_to_ptr.hbm [resolvable:$true] %s1336_s13 }
 0x523   : > { %v709_v25 = vsel %vm708_vm7, %v1273_v20, %v705_v22  ;;  %s1338_s17 = scalar_lea.hbm %s1337_s13, 64  ;;  %p1343_p8 = scmp.lt.s32.totalorder %s1337_s13, %s1825_s6 }
 0x524   : > { %v714_v26 = vsel %vm711_vm8, %v713_v24, %v709_v25  ;;  %p1339_p5 = scmp.ne.s32.totalorder %s1337_s13, %s1338_s17  ;;  %p1344_p10 = scmp.lt.s32.totalorder %s1342_s20, %s1338_s17 }
 0x525   : > { %v745_v27 = vmul.f32 %v743_v23, %v714_v26 }
 0x526   : > { %p1340_p6 = pnand %p1339_p5, %p1497_p9  ;;  %p1345_p13 = por %p1344_p10, %p1343_p8 }
 0x527   : > { %747 = vrot.lane.b32.xlu0 %v745_v27, %s1408_s14 }
 0x528   : > { %p1341_p7 = pneg %p1340_p6 }
 0x52a   : > { %p1346_p0 = pnand %p1345_p13, %p1341_p7 }
 0x52f   : > { %908 = vrot.lane.b32.xlu0 %v838_v47, %s1408_s14 }
 0x58d   : > { %v736_v11 = vpop.f32.mrf.mxu0 }
 0x58e   : > { %v737_v30 = vadd.f32 %v1598_v13, %v736_v11 }
 0x590   : > { %v739_v10 = vmul.f32 0.05, %v737_v30 }
 0x592   : > { %v740_v9 = vadd.f32 %v739_v10, %v667_v63 }
 0x599   : > { %v748_v7 = vpop.permute.xlu0 %747 }
 0x59a   : > { %v750_v8 = vadd.f32 %v748_v7, %v740_v9 }
 0x59c   : > { %1153 = vst.msk [vmem:[%s1600_s19 + $0x28] sm:$0xff] %vm336_vm1, %v750_v8  ;;  %1155 = vmatmul.msk.f32.vlgmr.msra.gmra.mxu2 %vm336_vm1, %v750_v8 }
 0x5a1   : > { %v909_v17 = vpop.permute.xlu0 %908 }
 0x61f   : > { %v776_v31 = vpop.f32.mrf.mxu2 }
 0x620   : > { %v777_v6 = vadd.f32 %v1593_v12, %v776_v31 }
 0x622   : > { %1274 = vtanh.f32 %v777_v6  ;;  %v1156_v5 = vmul.f32 -1.442695, %v777_v6 }
 0x624   : > { %1276 = vpow2.f32 %v1156_v5 }
 0x628   : > { %v1275_v32 = vpop.eup %1274 }
 0x629   : > { %1157 = vmatmul.msk.f32.vlgmr.msra.gmra.mxu3 %vm383_vm2, %v1275_v32 }
 0x62a   : > { %v1277_v33 = vpop.eup %1276 }
 0x62b   : > { %v783_v34 = vadd.f32 1.0, %v1277_v33 }
 0x62d   : > { %1278 = vrcp.f32 %v783_v34  ;;  %v795_v37 = vand.u32 2147483648, %v783_v34  ;;  %v793_v39 = vand.u32 2147483647, %v783_v34  ;;  %vm789_vm10 = vweird.f32 %v783_v34 }
 0x62f   : > { %v796_v42 = vor.u32 1.1754944e-38, %v795_v37  ;;  %vm794_vm12 = vcmp.eq.f32.partialorder %v793_v39, 8.507059e+37 }
 0x633   : > { %v1279_v4 = vpop.eup %1278 }
 0x634   : > { %v785_v35 = vmul.f32 %v1279_v4, %v783_v34  ;;  %vm790_vm9 = vweird.f32 %v1279_v4 }
 0x635   : > { %vm791_vm11 = vmor %vm789_vm10, %vm790_vm9 }
 0x636   : > { %v786_v36 = vsub.f32 1.0, %v785_v35 }
 0x638   : > { %v787_v38 = vmul.f32 %v1279_v4, %v786_v36 }
 0x63a   : > { %v788_v40 = vadd.f32 %v1279_v4, %v787_v38 }
 0x63c   : > { %v792_v43 = vsel %vm791_vm11, %v1279_v4, %v788_v40 }
 0x63d   : > { %v797_v44 = vsel %vm794_vm12, %v796_v42, %v792_v43 }
 0x63e   : > { %v828_v45 = vmul.f32 %v826_v41, %v797_v44 }
 0x640   : > { %830 = vrot.lane.b32.xlu2 %v828_v45, %s1408_s14 }
 0x648   : > { %991 = vrot.lane.b32.xlu2 %v921_v21, %s1408_s14 }
 0x69a   : > { %v831_v52 = vpop.permute.xlu2 %830 }
 0x6ac   : > { %v819_v48 = vpop.f32.mrf.mxu3 }
 0x6ad   : > { %v820_v49 = vadd.f32 %v1598_v13, %v819_v48 }
 0x6af   : > { %v822_v50 = vmul.f32 0.05, %v820_v49 }
 0x6b1   : > { %v823_v51 = vadd.f32 %v822_v50, %v750_v8 }
 0x6b3   : > { %v833_v53 = vadd.f32 %v831_v52, %v823_v51 }
 0x6b5   : > { %1158 = vst.msk [vmem:[%s1600_s19 + $0x30] sm:$0xff] %vm336_vm1, %v833_v53  ;;  %1160 = vmatmul.msk.f32.vlgmr.msrb.gmra.mxu3 %vm336_vm1, %v833_v53 }
 0x738   : > { %v859_v54 = vpop.f32.mrf.mxu3 }
 0x739   : > { %v860_v55 = vadd.f32 %v1593_v12, %v859_v54 }
 0x73b   : > { %1280 = vtanh.f32 %v860_v55  ;;  %v1161_v56 = vmul.f32 -1.442695, %v860_v55 }
 0x73d   : > { %1282 = vpow2.f32 %v1161_v56 }
 0x741   : > { %v1281_v57 = vpop.eup %1280 }
 0x742   : > { %1162 = vmatmul.msk.f32.vlgmr.msrb.gmra.mxu2 %vm383_vm2, %v1281_v57 }
 0x743   : > { %v1283_v58 = vpop.eup %1282 }
 0x744   : > { %v866_v59 = vadd.f32 1.0, %v1283_v58 }
 0x746   : > { %1284 = vrcp.f32 %v866_v59  ;;  %v878_v63 = vand.u32 2147483648, %v866_v59  ;;  %v876_v15 = vand.u32 2147483647, %v866_v59  ;;  %vm872_vm14 = vweird.f32 %v866_v59 }
 0x748   : > { %v879_v18 = vor.u32 1.1754944e-38, %v878_v63  ;;  %vm877_vm0 = vcmp.eq.f32.partialorder %v876_v15, 8.507059e+37 }
 0x74c   : > { %v1285_v60 = vpop.eup %1284 }
 0x74d   : > { %v868_v61 = vmul.f32 %v1285_v60, %v866_v59  ;;  %vm873_vm13 = vweird.f32 %v1285_v60 }
 0x74e   : > { %vm874_vm15 = vmor %vm872_vm14, %vm873_vm13 }
 0x74f   : > { %v869_v62 = vsub.f32 1.0, %v868_v61 }
 0x751   : > { %v870_v14 = vmul.f32 %v1285_v60, %v869_v62 }
 0x753   : > { %v871_v16 = vadd.f32 %v1285_v60, %v870_v14 }
 0x755   : > { %v875_v19 = vsel %vm874_vm15, %v1285_v60, %v871_v16 }
 0x756   : > { %v880_v20 = vsel %vm877_vm0, %v879_v18, %v875_v19 }
 0x757   : > { %v911_v3 = vmul.f32 %v909_v17, %v880_v20 }
 0x759   : > { %913 = vrot.lane.b32.xlu1 %v911_v3, %s1408_s14 }
 0x7c5   : > { %v902_v1 = vpop.f32.mrf.mxu2 }
 0x7c6   : > { %v903_v0 = vadd.f32 %v1598_v13, %v902_v1 }
 0x7c8   : > { %v905_v22 = vmul.f32 0.05, %v903_v0 }
 0x7ca   : > { %v906_v23 = vadd.f32 %v905_v22, %v833_v53 }
 0x7cb   : > { %v914_v24 = vpop.permute.xlu1 %913 }
 0x7cc   : > { %v916_v25 = vadd.f32 %v914_v24, %v906_v23 }
 0x7ce   : > { %1163 = vst.msk [vmem:[%s1600_s19 + $0x38] sm:$0xff] %vm336_vm1, %v916_v25  ;;  %1165 = vmatmul.msk.f32.vlgmr.msra.gmra.mxu0 %vm336_vm1, %v916_v25 }
 0x84b   : > { %v942_v26 = vpop.f32.mrf.mxu0 }
 0x84c   : > { %v943_v27 = vadd.f32 %v1593_v12, %v942_v26 }
 0x84e   : > { %1286 = vtanh.f32 %v943_v27  ;;  %v1166_v28 = vmul.f32 -1.442695, %v943_v27 }
 0x850   : > { %1288 = vpow2.f32 %v1166_v28 }
 0x854   : > { %v1287_v29 = vpop.eup %1286 }
 0x855   : > { %1167 = vmatmul.msk.f32.vlgmr.msra.gmra.mxu1 %vm383_vm2, %v1287_v29 }
 0x856   : > { %v1289_v11 = vpop.eup %1288 }
 0x857   : > { %v949_v30 = vadd.f32 1.0, %v1289_v11 }
 0x859   : > { %1290 = vrcp.f32 %v949_v30  ;;  %v961_v7 = vand.u32 2147483648, %v949_v30 }
 0x85f   : > { %v1291_v10 = vpop.eup %1290 }
 0x860   : > { %v951_v12 = vmul.f32 %v1291_v10, %v949_v30 }
 0x862   : > { %v952_v9 = vsub.f32 1.0, %v951_v12 }
 0x863   : > { %1349 = shalt.err (!%p1346_p0)
}
 0x864   : > { %s1409_s29 = smov 128   ;;  %s1410_s16 = smov 8   ;;  %v953_v8 = vmul.f32 %v1291_v10, %v952_v9  ;;  %vm956_vm2 = vweird.f32 %v1291_v10  ;;  %v959_v31 = vand.u32 2147483647, %v949_v30  ;;  %vm955_vm3 = vweird.f32 %v949_v30  ;;  %v992_v5 = vpop.permute.xlu2 %991 }
 0x865   : > { %1177 = dma.vmem_to_hbm [thread:$0]  (%p1497_p9), %s1016_s8, 1024, %s1018_s15, %s1002_s7, %s1409_s29, %s1409_s29, %s1410_s16   ;;  %vm957_vm4 = vmor %vm955_vm3, %vm956_vm2  ;;  %v962_v32 = vor.u32 1.1754944e-38, %v961_v7 }
 0x866   : > { %v954_v6 = vadd.f32 %v1291_v10, %v953_v8  ;;  %vm960_vm5 = vcmp.eq.f32.partialorder %v959_v31, 8.507059e+37 }
 0x868   : > { %v958_v33 = vsel %vm957_vm4, %v1291_v10, %v954_v6 }
 0x869   : > { %v963_v34 = vsel %vm960_vm5, %v962_v32, %v958_v33 }
 0x86a   : > { %v994_v4 = vmul.f32 %v992_v5, %v963_v34 }
 0x86c   : > { %996 = vrot.lane.b32.xlu0 %v994_v4, %s1408_s14 }
 0x8d2   : > { %v985_v35 = vpop.f32.mrf.mxu1 }
 0x8d3   : > { %v986_v36 = vadd.f32 %v1598_v13, %v985_v35 }
 0x8d5   : > { %v988_v37 = vmul.f32 0.05, %v986_v36 }
 0x8d7   : > { %v989_v38 = vadd.f32 %v988_v37, %v916_v25 }
 0x8de   : > { %v997_v39 = vpop.permute.xlu0 %996 }
 0x8df   : > { %v999_v40 = vadd.f32 %v997_v39, %v989_v38 }
 0x8e1   : > { %1000 = vst.msk [vmem:[#allocation2] sm:$0xff] %vm336_vm1, %v999_v40 }
 0x8e2 PF: > { %s1032_s10 = sand.u32 1, %s1384_s21   ;;  %p1184_p9 = pnand %p1122_p12, %p1504_p11 }
 0x8e3   : > { %s1033_s28 = scalar_lea.sflag [#allocation5], %s1032_s10 }
 0x8e4   : > { %p1185_p1 = pneg %p1184_p9 }
 0x8e6   : > { %1379 = dma.done.wait (%p1185_p1), %s1033_s28, 1024  }
 0x8e7   : > { %1381 = vsyncadd (%p1185_p1), %s1033_s28, 4294966272  ;;  %s22_s26 = sadd.s32 1, %s1404_s26   ;;  %s1832_s14 = sld [smem:[#allocation9_spill]] }
 0x8e8   : > { %p19_p2 = scmp.ge.s32.totalorder %s22_s26, 4   ;;  %s1833_s21 = smov %s1388_s22 }
 0x8e9   : > { %s1834_s22 = smov %s1392_s23  ;;  %s1835_s23 = smov %s1502_s11 }
 0x8ea   : > { %s1836_s24 = smov %s1400_s25  ;;  %21 = sbr.rel (!%p19_p2) target bundleno = 6 (0x6), region = 110 }
 0x8ed   : > { %s1837_s25 = smov %s1832_s14 }
 0x8ef   :  { %1039 = vsyncpa [#allocation4], 1 }
 0x8f0   :  { %1041 = vsyncpa [#allocation4 + $0x1], 1 }
 0x8f1   :  { %1042 = vsyncpa [#allocation5], 1 }
 0x8f2   :  { %1044 = vsyncpa [#allocation5 + $0x1], 1 }

</bundles_post_ra>
